<compile_context>
chip_gen: v6e
topology: v6e:2x2x1
jax: 0.10.0
libtpu: 0.0.40
codegen_flags: <defaults>
</compile_context>

<pallas_src>
import jax
import jax.numpy as jnp
from jax import lax
from jax.experimental import pallas as pl
from jax.experimental.pallas import tpu as pltpu

INFINITY_NUMBER = 1e12


# --------------------------------------------------------------------------- #
# Kernel
# --------------------------------------------------------------------------- #
def pooler_kernel(h_ref, mask_ref, w_ref, b_ref, o_ref):
    """One (batch-tile, seq-tile) grid step.

    h_ref:    (TB, TS, H)  hidden tile, native dtype (f32 or bf16)
    mask_ref: (TB, TS, 1)  int32 token mask tile (0 = padding)
    w_ref:    (H, H)       PyTorch Linear weight (out, in), VMEM-resident
    b_ref:    (1, H)       bias, VMEM-resident
    o_ref:    (TB, H) f32  output block; constant block index over the seq axis,
                           so it is resident in VMEM and doubles as the running
                           max accumulator.
    """
    k = pl.program_id(1)

    @pl.when(k == 0)
    def _init():
        o_ref[...] = jnp.full(o_ref.shape, -INFINITY_NUMBER, dtype=o_ref.dtype)

    h = h_ref[...].astype(jnp.float32)                     # no-op for f32 inputs
    pad = mask_ref[...] == 0                               # (TB, TS, 1) bool
    h_masked = jnp.where(pad, jnp.float32(-INFINITY_NUMBER), h)
    tile_max = jnp.max(h_masked, axis=1)                   # (TB, H)
    o_ref[...] = jnp.maximum(o_ref[...], tile_max)

    @pl.when(k == pl.num_programs(1) - 1)
    def _epilogue():
        pooled = o_ref[...]                                # (TB, H) f32
        # y = pooled @ W.T + b : contract pooled dim 1 with W's "in" dim 1, so the
        # MXU consumes W untransposed (no XLU transpose, no f32 weight copy).
        y = lax.dot_general(
            pooled, w_ref[...],
            dimension_numbers=(((1,), (1,)), ((), ())),
            preferred_element_type=jnp.float32,
        ) + b_ref[...].astype(jnp.float32)
        o_ref[...] = jnp.tanh(y).astype(o_ref.dtype)


# --------------------------------------------------------------------------- #
# VMEM-aware tile selection
# --------------------------------------------------------------------------- #
def _round_up(x, m):
    return (x + m - 1) // m * m


def _tpu_vmem_capacity_bytes():
    """Per-core VMEM capacity; conservative 64 MiB (v7x per-TC) if unknown."""
    cap = 64 * 1024 * 1024
    try:
        info = pltpu.get_tpu_info()
        cap = int(getattr(info, "vmem_capacity_bytes", cap))
    except Exception:
        pass
    return cap


def _vmem_estimate_bytes(tb, ts, H, h_itemsize, w_itemsize, resident_bufs):
    """Padded-VMEM footprint of all pipeline buffers for a (tb, ts) tiling."""
    h_lanes = _round_up(H, 128)
    ts_sub = _round_up(ts, 8)
    hidden = 2 * tb * ts_sub * h_lanes * h_itemsize          # double-buffered hidden tile
    mask = 2 * tb * ts_sub * 128 * 4                         # (tb, ts, 1) i32: 1 lane-pads to 128
    wgt = resident_bufs * _round_up(H, 8) * h_lanes * w_itemsize
    bia = resident_bufs * 8 * h_lanes * 4
    outb = 2 * _round_up(tb, 8) * h_lanes * 4                # double-buffered (tb, H) f32 output
    return hidden + mask + wgt + bia + outb


def _pick_tiles(B, S_pad, H, h_itemsize, w_itemsize, budget, resident_bufs,
                tb_target=128, ts_target=512):
    """Largest VMEM-feasible tiles; prefer >=2 batch grid steps (2-TC sharding)."""
    tb_aligned = [d for d in range(8, B + 1, 8) if B % d == 0]
    preferred = sorted((d for d in tb_aligned if d <= tb_target and B // d >= 2),
                       reverse=True)
    rest = sorted((d for d in tb_aligned if d not in preferred), reverse=True)
    tb_order = preferred + rest
    if B not in tb_order:
        tb_order.append(B)                                   # full extent is always legal

    ts_order = sorted((d for d in range(8, min(S_pad, ts_target) + 1, 8)
                       if S_pad % d == 0), reverse=True)
    if not ts_order:
        ts_order = [S_pad]

    for tb in tb_order:
        for ts in ts_order:
            if _vmem_estimate_bytes(tb, ts, H, h_itemsize, w_itemsize,
                                    resident_bufs) <= budget:
                return tb, ts
    return min(tb_order), ts_order[-1]                       # smallest-footprint fallback


# --------------------------------------------------------------------------- #
# Wrapper
# --------------------------------------------------------------------------- #
def pooler_forward(hidden_states, token_mask, weight, bias, *, tb=None, ts=None):
    B, S, H = hidden_states.shape
    assert weight.shape == (H, H) and bias.shape == (H,)

    # Pad the sequence axis to a multiple of 8 so the seq tile is always
    # sublane-aligned (pad rows carry mask==0 and are neutralized by the max).
    S_pad = _round_up(S, 8)
    mask2 = token_mask.astype(jnp.int32)
    if S_pad != S:
        hidden_states = jnp.pad(hidden_states, ((0, 0), (0, S_pad - S), (0, 0)))
        mask2 = jnp.pad(mask2, ((0, 0), (0, S_pad - S)))

    # (B, S, 1) mask: S on sublanes, broadcast over H is a cheap lane broadcast.
    mask3 = mask2.reshape(B, S_pad, 1)
    bias2 = bias.reshape(1, H)

    h_itemsize = hidden_states.dtype.itemsize
    w_itemsize = weight.dtype.itemsize

    # Per-generation VMEM budgeting (v5e/v6e: 128 MiB, v7x: 64 MiB per TC).
    cap = _tpu_vmem_capacity_bytes()
    vmem_limit = int(min(cap * 0.85, 100 * 1024 * 1024))
    tile_budget = int(vmem_limit * 0.85)

    cost = pl.CostEstimate(
        flops=2 * B * H * H,
        transcendentals=B * H,
        bytes_accessed=int(
            hidden_states.size * h_itemsize
            + mask3.size * 4
            + weight.size * w_itemsize
            + bias2.size * bias2.dtype.itemsize
            + B * H * 4
        ),
    )

    # NOTE: for lane-dense loads/stores H should ideally be a multiple of 128
    # (true for BERT's 768); smaller H (demo's 32) still works, just with padded lanes.
    def _run(single_buffer_resident):
        resident_bufs = 1 if single_buffer_resident else 2
        tb_sel, ts_sel = _pick_tiles(B, S_pad, H, h_itemsize, w_itemsize,
                                     tile_budget, resident_bufs)
        if tb is not None:
            tb_sel = tb
        if ts is not None:
            ts_sel = ts

        resident_kwargs = (
            dict(pipeline_mode=pl.Buffered(1)) if single_buffer_resident else {}
        )
        w_spec = pl.BlockSpec((H, H), lambda i, k: (0, 0), **resident_kwargs)
        b_spec = pl.BlockSpec((1, H), lambda i, k: (0, 0), **resident_kwargs)

        out = pl.pallas_call(
            pooler_kernel,
            out_shape=jax.ShapeDtypeStruct((B, H), jnp.float32),
            grid=(B // tb_sel, S_pad // ts_sel),
            in_specs=[
                pl.BlockSpec((tb_sel, ts_sel, H), lambda i, k: (i, k, 0)),
                pl.BlockSpec((tb_sel, ts_sel, 1), lambda i, k: (i, k, 0)),
                w_spec,                                      # resident weight
                b_spec,                                      # resident bias
            ],
            out_specs=pl.BlockSpec((tb_sel, H), lambda i, k: (i, 0)),
            compiler_params=pltpu.CompilerParams(
                dimension_semantics=("parallel", "arbitrary"),
                vmem_limit_bytes=vmem_limit,
            ),
            cost_estimate=cost,
        )(hidden_states, mask3, weight, bias2)
        # Block here so any lowering/compile issue surfaces inside the fallback
        # handling below (and results are ready for immediate use).
        return jax.block_until_ready(out)

    try:
        return _run(single_buffer_resident=True)
    except Exception:
        # pl.Buffered(1) single-buffering of the resident weight/bias may not be
        # supported by this JAX/Mosaic build; retry with default double buffering
        # (the VMEM budget already accounts for both cases).
        return _run(single_buffer_resident=False)


if __name__ == "__main__":
    B, S, H = 2, 8, 32  # small (batch, seq, hidden) consistent with the module

    key = jax.random.PRNGKey(0)
    k_h, k_w, k_b, k_m = jax.random.split(key, 4)

    hidden_states = jax.random.normal(k_h, (B, S, H), dtype=jnp.float32)

    # token_mask: 1 for real tokens, 0 for padding (second sequence has padding).
    token_mask = jnp.ones((B, S), dtype=jnp.int32)
    token_mask = token_mask.at[1, S // 2:].set(0)

    # Deterministic Linear(H, H) params (PyTorch-style uniform(-1/sqrt(H), 1/sqrt(H))).
    bound = 1.0 / jnp.sqrt(jnp.float32(H))
    weight = jax.random.uniform(k_w, (H, H), jnp.float32, -bound, bound)
    bias = jax.random.uniform(k_b, (H,), jnp.float32, -bound, bound)

    out = pooler_forward(hidden_states, token_mask, weight, bias)
    out = jax.block_until_ready(out)

    # Pure-JAX reference check (mirrors masked_fill(-1e12) + max + Linear + Tanh).
    pool_mask = (token_mask == 0)[:, :, None]
    ref_pooled = jnp.max(jnp.where(pool_mask, -INFINITY_NUMBER, hidden_states), axis=1)
    ref = jnp.tanh(ref_pooled @ weight.T + bias)
    assert jnp.allclose(out, ref, atol=1e-5, rtol=1e-5), "mismatch vs reference"

    print("KERNEL_OK")
</pallas_src>

<mosaic_0001>
module attributes {stable_mosaic.version = 11 : i64} {
  func.func @pooler_kernel(%arg0: i32, %arg1: i32, %arg2: memref<2x8x32xf32, #tpu.memory_space<vmem>>, %arg3: memref<2x8x1xi32, #tpu.memory_space<vmem>>, %arg4: memref<32x32xf32, #tpu.memory_space<vmem>>, %arg5: memref<1x32xf32, #tpu.memory_space<vmem>>, %arg6: memref<2x32xf32, #tpu.memory_space<vmem>>) attributes {dimension_semantics = [#tpu.dimension_semantics<parallel>, #tpu.dimension_semantics<arbitrary>], iteration_bounds = array<i64: 1, 1>, scalar_prefetch = 0 : i64, scratch_operands = 0 : i64, tpu.core_type = #tpu.core_type<tc>, window_params = [{transform_indices = @transform_0, window_bounds = array<i64: 2, 8, 32>}, {transform_indices = @transform_1, window_bounds = array<i64: 2, 8, 1>}, {pipeline_mode = #tpu.pipeline_mode<synchronous>, transform_indices = @transform_2, window_bounds = array<i64: 32, 32>}, {pipeline_mode = #tpu.pipeline_mode<synchronous>, transform_indices = @transform_3, window_bounds = array<i64: 1, 32>}, {transform_indices = @transform_4, window_bounds = array<i64: 2, 32>}]} {
    %c0_i32 = arith.constant 0 : i32
    %0 = arith.cmpi eq, %arg1, %c0_i32 : i32
    %1 = arith.extui %0 : i1 to i32
    %c0_i32_0 = arith.constant 0 : i32
    %2 = arith.cmpi ne, %1, %c0_i32_0 : i32
    scf.if %2 {
      %cst_14 = arith.constant -9.99999995E+11 : f32
      %18 = vector.broadcast %cst_14 : f32 to vector<2x32xf32>
      %c0_15 = arith.constant 0 : index
      %c0_16 = arith.constant 0 : index
      %19 = vector.load %arg6[%c0_15, %c0_16] : memref<2x32xf32, #tpu.memory_space<vmem>>, vector<2x32xf32>
      tpu.vector_store %arg6[%c0_15, %c0_16], %18 {strides = array<i32>} : memref<2x32xf32, #tpu.memory_space<vmem>>, vector<2x32xf32>,
    } else {
    }
    %c0 = arith.constant 0 : index
    %c0_1 = arith.constant 0 : index
    %c0_2 = arith.constant 0 : index
    %3 = vector.load %arg2[%c0, %c0_1, %c0_2] : memref<2x8x32xf32, #tpu.memory_space<vmem>>, vector<2x8x32xf32>
    %c0_3 = arith.constant 0 : index
    %c0_4 = arith.constant 0 : index
    %c0_5 = arith.constant 0 : index
    %4 = vector.load %arg3[%c0_3, %c0_4, %c0_5] : memref<2x8x1xi32, #tpu.memory_space<vmem>>, vector<2x8x1xi32>
    %c0_i32_6 = arith.constant 0 : i32
    %5 = vector.broadcast %c0_i32_6 : i32 to vector<2x8x1xi32>
    %6 = arith.cmpi eq, %4, %5 : vector<2x8x1xi32>
    %cst = arith.constant -9.99999995E+11 : f32
    %7 = vector.shape_cast %6 : vector<2x8x1xi1> to vector<2x8x1xi1>
    %8 = vector.broadcast %7 : vector<2x8x1xi1> to vector<2x8x32xi1>
    %9 = vector.broadcast %cst : f32 to vector<2x8x32xf32>
    %10 = arith.select %8, %9, %3 : vector<2x8x32xi1>, vector<2x8x32xf32>
    %cst_7 = arith.constant dense<0xFF800000> : vector<2x32xf32>
    %11 = vector.multi_reduction <maximumf>, %10, %cst_7 [1] : vector<2x8x32xf32> to vector<2x32xf32>
    %c0_8 = arith.constant 0 : index
    %c0_9 = arith.constant 0 : index
    %12 = vector.load %arg6[%c0_8, %c0_9] : memref<2x32xf32, #tpu.memory_space<vmem>>, vector<2x32xf32>
    %13 = arith.maximumf %12, %11 : vector<2x32xf32>
    %c0_10 = arith.constant 0 : index
    %c0_11 = arith.constant 0 : index
    %14 = vector.load %arg6[%c0_10, %c0_11] : memref<2x32xf32, #tpu.memory_space<vmem>>, vector<2x32xf32>
    tpu.vector_store %arg6[%c0_10, %c0_11], %13 {strides = array<i32>} : memref<2x32xf32, #tpu.memory_space<vmem>>, vector<2x32xf32>,
    %c0_i32_12 = arith.constant 0 : i32
    %15 = arith.cmpi eq, %arg1, %c0_i32_12 : i32
    %16 = arith.extui %15 : i1 to i32
    %c0_i32_13 = arith.constant 0 : i32
    %17 = arith.cmpi ne, %16, %c0_i32_13 : i32
    scf.if %17 {
      %c0_14 = arith.constant 0 : index
      %c0_15 = arith.constant 0 : index
      %18 = vector.load %arg6[%c0_14, %c0_15] : memref<2x32xf32, #tpu.memory_space<vmem>>, vector<2x32xf32>
      %c0_16 = arith.constant 0 : index
      %c0_17 = arith.constant 0 : index
      %19 = vector.load %arg4[%c0_16, %c0_17] : memref<32x32xf32, #tpu.memory_space<vmem>>, vector<32x32xf32>
      %cst_18 = arith.constant dense<0.000000e+00> : vector<2x32xf32>
      %20 = tpu.matmul %18, %19, %cst_18 {dimension_numbers = #tpu.dot_dimension_numbers<[1], [1], [0], [0], [0, 0, 1, 0], [], []>} : vector<2x32xf32>, vector<32x32xf32>, vector<2x32xf32> -> vector<2x32xf32>
      %c0_19 = arith.constant 0 : index
      %c0_20 = arith.constant 0 : index
      %21 = vector.load %arg5[%c0_19, %c0_20] : memref<1x32xf32, #tpu.memory_space<vmem>>, vector<1x32xf32>
      %22 = vector.broadcast %21 : vector<1x32xf32> to vector<2x32xf32>
      %23 = arith.addf %20, %22 : vector<2x32xf32>
      %24 = math.tanh %23 : vector<2x32xf32>
      %c0_21 = arith.constant 0 : index
      %c0_22 = arith.constant 0 : index
      %25 = vector.load %arg6[%c0_21, %c0_22] : memref<2x32xf32, #tpu.memory_space<vmem>>, vector<2x32xf32>
      tpu.vector_store %arg6[%c0_21, %c0_22], %24 {strides = array<i32>} : memref<2x32xf32, #tpu.memory_space<vmem>>, vector<2x32xf32>,
    } else {
    }
    return
  }
  func.func @transform_0(%arg0: i32, %arg1: i32) -> (i32, i32, i32) {
    %c0_i32 = arith.constant 0 : i32
    %c0_i32_0 = arith.constant 0 : i32
    return %arg0, %arg1, %c0_i32 : i32, i32, i32
  }
  func.func @transform_1(%arg0: i32, %arg1: i32) -> (i32, i32, i32) {
    %c0_i32 = arith.constant 0 : i32
    %c0_i32_0 = arith.constant 0 : i32
    return %arg0, %arg1, %c0_i32 : i32, i32, i32
  }
  func.func @transform_2(%arg0: i32, %arg1: i32) -> (i32, i32) {
    %c0_i32 = arith.constant 0 : i32
    %c0_i32_0 = arith.constant 0 : i32
    %c0_i32_1 = arith.constant 0 : i32
    return %c0_i32, %c0_i32_0 : i32, i32
  }
  func.func @transform_3(%arg0: i32, %arg1: i32) -> (i32, i32) {
    %c0_i32 = arith.constant 0 : i32
    %c0_i32_0 = arith.constant 0 : i32
    %c0_i32_1 = arith.constant 0 : i32
    return %c0_i32, %c0_i32_0 : i32, i32
  }
  func.func @transform_4(%arg0: i32, %arg1: i32) -> (i32, i32) {
    %c0_i32 = arith.constant 0 : i32
    %c0_i32_0 = arith.constant 0 : i32
    return %arg0, %c0_i32 : i32, i32
  }
}

module attributes {stable_mosaic.version = 11 : i64} {
  func.func @pooler_kernel(%arg0: i32, %arg1: i32, %arg2: memref<2x8x32xf32, #tpu.memory_space<vmem>>, %arg3: memref<2x8x1xi32, #tpu.memory_space<vmem>>, %arg4: memref<32x32xf32, #tpu.memory_space<vmem>>, %arg5: memref<1x32xf32, #tpu.memory_space<vmem>>, %arg6: memref<2x32xf32, #tpu.memory_space<vmem>>) attributes {dimension_semantics = [#tpu.dimension_semantics<parallel>, #tpu.dimension_semantics<arbitrary>], iteration_bounds = array<i64: 1, 1>, scalar_prefetch = 0 : i64, scratch_operands = 0 : i64, tpu.core_type = #tpu.core_type<tc>, window_params = [{transform_indices = @transform_0, window_bounds = array<i64: 2, 8, 32>}, {transform_indices = @transform_1, window_bounds = array<i64: 2, 8, 1>}, {pipeline_mode = #tpu.pipeline_mode<synchronous>, transform_indices = @transform_2, window_bounds = array<i64: 32, 32>}, {pipeline_mode = #tpu.pipeline_mode<synchronous>, transform_indices = @transform_3, window_bounds = array<i64: 1, 32>}, {transform_indices = @transform_4, window_bounds = array<i64: 2, 32>}]} {
    %c0_i32 = arith.constant 0 : i32
    %0 = arith.cmpi eq, %arg1, %c0_i32 : i32
    %1 = arith.extui %0 : i1 to i32
    %c0_i32_0 = arith.constant 0 : i32
    %2 = arith.cmpi ne, %1, %c0_i32_0 : i32
    scf.if %2 {
      %cst_14 = arith.constant -9.99999995E+11 : f32
      %18 = vector.broadcast %cst_14 : f32 to vector<2x32xf32>
      %c0_15 = arith.constant 0 : index
      %c0_16 = arith.constant 0 : index
      %19 = vector.load %arg6[%c0_15, %c0_16] : memref<2x32xf32, #tpu.memory_space<vmem>>, vector<2x32xf32>
      tpu.vector_store %arg6[%c0_15, %c0_16], %18 {strides = array<i32>} : memref<2x32xf32, #tpu.memory_space<vmem>>, vector<2x32xf32>,
    } else {
    }
    %c0 = arith.constant 0 : index
    %c0_1 = arith.constant 0 : index
    %c0_2 = arith.constant 0 : index
    %3 = vector.load %arg2[%c0, %c0_1, %c0_2] : memref<2x8x32xf32, #tpu.memory_space<vmem>>, vector<2x8x32xf32>
    %c0_3 = arith.constant 0 : index
    %c0_4 = arith.constant 0 : index
    %c0_5 = arith.constant 0 : index
    %4 = vector.load %arg3[%c0_3, %c0_4, %c0_5] : memref<2x8x1xi32, #tpu.memory_space<vmem>>, vector<2x8x1xi32>
    %c0_i32_6 = arith.constant 0 : i32
    %5 = vector.broadcast %c0_i32_6 : i32 to vector<2x8x1xi32>
    %6 = arith.cmpi eq, %4, %5 : vector<2x8x1xi32>
    %cst = arith.constant -9.99999995E+11 : f32
    %7 = vector.shape_cast %6 : vector<2x8x1xi1> to vector<2x8x1xi1>
    %8 = vector.broadcast %7 : vector<2x8x1xi1> to vector<2x8x32xi1>
    %9 = vector.broadcast %cst : f32 to vector<2x8x32xf32>
    %10 = arith.select %8, %9, %3 : vector<2x8x32xi1>, vector<2x8x32xf32>
    %cst_7 = arith.constant dense<0xFF800000> : vector<2x32xf32>
    %11 = vector.multi_reduction <maximumf>, %10, %cst_7 [1] : vector<2x8x32xf32> to vector<2x32xf32>
    %c0_8 = arith.constant 0 : index
    %c0_9 = arith.constant 0 : index
    %12 = vector.load %arg6[%c0_8, %c0_9] : memref<2x32xf32, #tpu.memory_space<vmem>>, vector<2x32xf32>
    %13 = arith.maximumf %12, %11 : vector<2x32xf32>
    %c0_10 = arith.constant 0 : index
    %c0_11 = arith.constant 0 : index
    %14 = vector.load %arg6[%c0_10, %c0_11] : memref<2x32xf32, #tpu.memory_space<vmem>>, vector<2x32xf32>
    tpu.vector_store %arg6[%c0_10, %c0_11], %13 {strides = array<i32>} : memref<2x32xf32, #tpu.memory_space<vmem>>, vector<2x32xf32>,
    %c0_i32_12 = arith.constant 0 : i32
    %15 = arith.cmpi eq, %arg1, %c0_i32_12 : i32
    %16 = arith.extui %15 : i1 to i32
    %c0_i32_13 = arith.constant 0 : i32
    %17 = arith.cmpi ne, %16, %c0_i32_13 : i32
    scf.if %17 {
      %c0_14 = arith.constant 0 : index
      %c0_15 = arith.constant 0 : index
      %18 = vector.load %arg6[%c0_14, %c0_15] : memref<2x32xf32, #tpu.memory_space<vmem>>, vector<2x32xf32>
      %c0_16 = arith.constant 0 : index
      %c0_17 = arith.constant 0 : index
      %19 = vector.load %arg4[%c0_16, %c0_17] : memref<32x32xf32, #tpu.memory_space<vmem>>, vector<32x32xf32>
      %cst_18 = arith.constant dense<0.000000e+00> : vector<2x32xf32>
      %20 = tpu.matmul %18, %19, %cst_18 {dimension_numbers = #tpu.dot_dimension_numbers<[1], [1], [0], [0], [0, 0, 1, 0], [], []>} : vector<2x32xf32>, vector<32x32xf32>, vector<2x32xf32> -> vector<2x32xf32>
      %c0_19 = arith.constant 0 : index
      %c0_20 = arith.constant 0 : index
      %21 = vector.load %arg5[%c0_19, %c0_20] : memref<1x32xf32, #tpu.memory_space<vmem>>, vector<1x32xf32>
      %22 = vector.broadcast %21 : vector<1x32xf32> to vector<2x32xf32>
      %23 = arith.addf %20, %22 : vector<2x32xf32>
      %24 = math.tanh %23 : vector<2x32xf32>
      %c0_21 = arith.constant 0 : index
      %c0_22 = arith.constant 0 : index
      %25 = vector.load %arg6[%c0_21, %c0_22] : memref<2x32xf32, #tpu.memory_space<vmem>>, vector<2x32xf32>
      tpu.vector_store %arg6[%c0_21, %c0_22], %24 {strides = array<i32>} : memref<2x32xf32, #tpu.memory_space<vmem>>, vector<2x32xf32>,
    } else {
    }
    return
  }
  func.func @transform_0(%arg0: i32, %arg1: i32) -> (i32, i32, i32) {
    %c0_i32 = arith.constant 0 : i32
    %c0_i32_0 = arith.constant 0 : i32
    return %arg0, %arg1, %c0_i32 : i32, i32, i32
  }
  func.func @transform_1(%arg0: i32, %arg1: i32) -> (i32, i32, i32) {
    %c0_i32 = arith.constant 0 : i32
    %c0_i32_0 = arith.constant 0 : i32
    return %arg0, %arg1, %c0_i32 : i32, i32, i32
  }
  func.func @transform_2(%arg0: i32, %arg1: i32) -> (i32, i32) {
    %c0_i32 = arith.constant 0 : i32
    %c0_i32_0 = arith.constant 0 : i32
    %c0_i32_1 = arith.constant 0 : i32
    return %c0_i32, %c0_i32_0 : i32, i32
  }
  func.func @transform_3(%arg0: i32, %arg1: i32) -> (i32, i32) {
    %c0_i32 = arith.constant 0 : i32
    %c0_i32_0 = arith.constant 0 : i32
    %c0_i32_1 = arith.constant 0 : i32
    return %c0_i32, %c0_i32_0 : i32, i32
  }
  func.func @transform_4(%arg0: i32, %arg1: i32) -> (i32, i32) {
    %c0_i32 = arith.constant 0 : i32
    %c0_i32_0 = arith.constant 0 : i32
    return %arg0, %c0_i32 : i32, i32
  }
}

</mosaic_0001>

<bundles_post_ra>
// kernel: tpu_custom_call.1
= control target key start
LH: loop header
LB: loop body
LE: loop exit
PB: predicated region body
PF: predicated region fallthrough
CT: control target
= control target key end

     0   :  { %9 = vsyncpa [#allocation3], 0  ;;  %s338_s0 = inlined_call_operand.vmem [shape: f32[2,8,32], index: 0, kind: input, shape index: {}]   ;;  %s339_s1 = inlined_call_operand.vmem [shape: s32[2,8,1], index: 1, kind: input, shape index: {}]   ;;  %s340_s2 = inlined_call_operand.hbm [shape: f32[32,32], index: 2, kind: input, shape index: {}]   ;;  %s341_s3 = inlined_call_operand.vmem [shape: f32[1,32], index: 3, kind: input, shape index: {}]   ;;  %s342_s4 = inlined_call_operand.hbm [shape: f32[2,32], index: 4, kind: output, shape index: {}]  }
   0x1   :  { %10 = vsyncpa [#allocation4], 0  ;;  %s274_s15 = smov [#allocation2]  }
   0x2   :  { %s20_s16 = sshll.u32 %s274_s15, 4  ;;  %s21_s16 = int_to_ptr.vmem [resolvable:$true] %s20_s16 }
   0x3   :  { %s238_s17 = scalar_lea.vmem %s21_s16, 512  ;;  %p243_p1 = scmp.lt.s32.totalorder %s21_s16, %s21_s16 }
   0x4   :  { %p239_p0 = scmp.ne.s32.totalorder %s21_s16, %s238_s17  ;;  %p244_p2 = scmp.lt.s32.totalorder %s238_s17, %s238_s17 }
   0x6   :  { %p245_p3 = por %p244_p2, %p243_p1 }
   0x8   :  { %p246_p4 = pnand %p245_p3, %p239_p0 }
   0xa   :  { %249 = shalt.err (!%p246_p4)
}
   0xb   :  { %s275_s18 = smov 128   ;;  %s276_s19 = smov 8  }
   0xc   :  { %26 = dma.hbm_to_vmem [thread:$0]  %s340_s2, 512, %s21_s16, [#allocation3], %s275_s18, %s275_s18, %s276_s19  }
   0xd   :  { %270 = dma.done.wait [#allocation3], 512  }
   0xe   :  { %271 = vsyncadd [#allocation3], 4294966784  ;;  %v277_v0 = vmov 0   ;;  %v40_v1 = vld [vmem:[%s339_s1] sm:$0xff]  ;;  %v41_v2 = vld [vmem:[%s339_s1 + $0x8] sm:$0xff]  ;;  %vm36_vm2 = vcmask 254976  }
   0xf   :  { %227 = vset.pattern.permute.xlu0 %v277_v0  ;;  %vm42_vm0 = vcmp.eq.s32.totalorder %v40_v1, 0  ;;  %vm43_vm1 = vcmp.eq.s32.totalorder %v41_v2, 0  ;;  %v278_v5 = vmov -1e+12   ;;  %vm56_vm3 = vcmask 261120   ;;  %v87_v7 = vld [vmem:[#allocation2 + $0x18] sm:$0xff] }
  0x10   :  { %v44_v3 = vsel %vm42_vm0, 1, %v277_v0  ;;  %v45_v4 = vsel %vm43_vm1, 1, %v277_v0  ;;  %37 = vst.msk [vmem:[#allocation5] sm:$0x3] %vm36_vm2, %v278_v5  ;;  %v279_v6 = vmov 0.0   ;;  %v86_v8 = vld [vmem:[#allocation2 + $0x10] sm:$0xff] }
  0x11   :  { %47 = vperm.xlu0 %227, %v44_v3   ;;  %208 = vmatprep.subr.mxu0 %v279_v6  ;;  %v85_v9 = vld [vmem:[#allocation2 + $0x8] sm:$0xff]  ;;  %vm280_vm4 = vmmov 0   ;;  %v84_v10 = vld [vmem:[#allocation2] sm:$0xff]  ;;  %vm74_vm7 = vcmask 1041409   ;;  %s281_s29 = smov [#allocation5]  }
  0x12   :  { %209 = vmatpush3.xpose.msk.msra.mxu0 %vm56_vm3, %v87_v7  ;;  %216 = vmatprep.mubr.msk.f32.mxu0 %vm280_vm4, %v279_v6  ;;  %v38_v11 = vld [vmem:[%s338_s0] sm:$0xff]  ;;  %v39_v15 = vld [vmem:[%s338_s0 + $0x8] sm:$0xff]  ;;  %s188_s30 = sshll.u32 %s281_s29, 4  ;;  %s189_s30 = int_to_ptr.vmem [resolvable:$true] %s188_s30 }
  0x13   :  { %210 = vmatprep.subr.mxu0 %v279_v6  ;;  %v197_v35 = vld [vmem:[%s341_s3] ss:$0 sm:$0xff]  ;;  %s250_s5 = scalar_lea.vmem %s189_s30, 32  ;;  %p255_p6 = scmp.lt.s32.totalorder %s189_s30, %s189_s30 }
  0x14   :  { %p251_p5 = scmp.ne.s32.totalorder %s189_s30, %s250_s5  ;;  %p256_p7 = scmp.lt.s32.totalorder %s250_s5, %s250_s5 }
  0x15   :  { %50 = vperm.xlu0 %227, %v45_v4  }
  0x16   :  { %211 = vmatpush3.xpose.msk.msra.mxu0 %vm56_vm3, %v86_v8  ;;  %p257_p8 = por %p256_p7, %p255_p6 }
  0x17   :  { %212 = vmatprep.subr.mxu0 %v279_v6  ;;  %v71_v31 = vld [vmem:[#allocation5] sm:$0x3] }
  0x18   :  { %p258_p9 = pnand %p257_p8, %p251_p5 }
  0x1a   :  { %213 = vmatpush3.xpose.msk.msra.mxu0 %vm56_vm3, %v85_v9 }
  0x1b   :  { %214 = vmatprep.subr.mxu0 %v279_v6 }
  0x1e   :  { %215 = vmatpush3.xpose.msk.msra.mxu0 %vm56_vm3, %v84_v10 }
  0x8c   :  { %v48_v12 = vpop.permute.xlu0 %47 }
  0x8d   :  { %vm52_vm5 = vcmp.eq.s32.totalorder %v48_v12, 1 }
  0x8e   :  { %v54_v13 = vsel %vm52_vm5, -1e+12, %v38_v11 }
  0x8f   :  { %v57_v14 = vsel %vm56_vm3, %v54_v13, -inf }
  0x90   :  { %v58_v16 = vrot.slane %v57_v14, 4  ;;  %v51_v17 = vpop.permute.xlu0 %50 }
  0x91   :  { %vm53_vm6 = vcmp.eq.s32.totalorder %v51_v17, 1 }
  0x92   :  { %v59_v18 = vmax.f32 %v57_v14, %v58_v16  ;;  %v55_v19 = vsel %vm53_vm6, -1e+12, %v39_v15 }
  0x93   :  { %v64_v20 = vsel %vm56_vm3, %v55_v19, -inf }
  0x94   :  { %v60_v21 = vrot.slane %v59_v18, 2  ;;  %v65_v22 = vrot.slane %v64_v20, 4 }
  0x96   :  { %v61_v23 = vmax.f32 %v59_v18, %v60_v21  ;;  %v66_v24 = vmax.f32 %v64_v20, %v65_v22 }
  0x98   :  { %v67_v25 = vrot.slane %v66_v24, 2  ;;  %v62_v26 = vrot.slane %v61_v23, 1 }
  0x9a   :  { %v68_v27 = vmax.f32 %v66_v24, %v67_v25  ;;  %v63_v29 = vmax.f32 %v61_v23, %v62_v26 }
  0x9c   :  { %v69_v28 = vrot.slane %v68_v27, 1 }
  0x9e   :  { %v70_v30 = vmax.f32 %v68_v27, %v69_v28 }
  0xa0   :  { %v75_v32 = vsel %vm74_vm7, %v70_v30, %v63_v29 }
  0xa1   :  { %v77_v33 = vmax.f32 %v71_v31, %v75_v32 }
  0xa3   :  { %79 = vst.msk [vmem:[#allocation5] sm:$0x3] %vm36_vm2, %v77_v33 }
  0xaa   :  { %v83_v34 = vld [vmem:[#allocation5] sm:$0x3] }
  0xab   :  { %217 = vmatmul.mubr.msk.f32.vlgmr.msra.gmra.mxu0 %vm56_vm3, %v83_v34 }
 0x16b   :  { %v176_v36 = vpop.f32.mrf.mxu0 }
 0x16c   :  { %v177_v37 = vadd.f32 %v197_v35, %v176_v36 }
 0x16d   :  { %v218_v38 = vpop.f32.mrf.mxu0 }
 0x16e   :  { %228 = vtanh.f32 %v177_v37 }
 0x17b   :  { %v229_v39 = vpop.eup %228 }
 0x17c   :  { %181 = vst.msk [vmem:[#allocation5] sm:$0x3] %vm36_vm2, %v229_v39 }
 0x17d   :  { %261 = shalt.err (!%p258_p9)
}
 0x17e   :  { %191 = dma.vmem_to_hbm [thread:$0]  %s189_s30, 32, %s342_s4, [#allocation4]  }
 0x17f   :  { %272 = dma.done.wait [#allocation4], 32  }
 0x180   :  { %273 = vsyncadd [#allocation4], 4294967264 }
 0x181   :  { %195 = vsyncpa [#allocation3], 1 }
 0x182   :  { %196 = vsyncpa [#allocation4], 1 }

// kernel: tpu_custom_call.1
= control target key start
LH: loop header
LB: loop body
LE: loop exit
PB: predicated region body
PF: predicated region fallthrough
CT: control target
= control target key end

     0   :  { %9 = vsyncpa [#allocation3], 0  ;;  %s338_s0 = inlined_call_operand.vmem [shape: f32[2,8,32], index: 0, kind: input, shape index: {}]   ;;  %s339_s1 = inlined_call_operand.vmem [shape: s32[2,8,1], index: 1, kind: input, shape index: {}]   ;;  %s340_s2 = inlined_call_operand.hbm [shape: f32[32,32], index: 2, kind: input, shape index: {}]   ;;  %s341_s3 = inlined_call_operand.vmem [shape: f32[1,32], index: 3, kind: input, shape index: {}]   ;;  %s342_s4 = inlined_call_operand.hbm [shape: f32[2,32], index: 4, kind: output, shape index: {}]  }
   0x1   :  { %10 = vsyncpa [#allocation4], 0  ;;  %s274_s15 = smov [#allocation2]  }
   0x2   :  { %s20_s16 = sshll.u32 %s274_s15, 4  ;;  %s21_s16 = int_to_ptr.vmem [resolvable:$true] %s20_s16 }
   0x3   :  { %s238_s17 = scalar_lea.vmem %s21_s16, 512  ;;  %p243_p1 = scmp.lt.s32.totalorder %s21_s16, %s21_s16 }
   0x4   :  { %p239_p0 = scmp.ne.s32.totalorder %s21_s16, %s238_s17  ;;  %p244_p2 = scmp.lt.s32.totalorder %s238_s17, %s238_s17 }
   0x6   :  { %p245_p3 = por %p244_p2, %p243_p1 }
   0x8   :  { %p246_p4 = pnand %p245_p3, %p239_p0 }
   0xa   :  { %249 = shalt.err (!%p246_p4)
}
   0xb   :  { %s275_s18 = smov 128   ;;  %s276_s19 = smov 8  }
   0xc   :  { %26 = dma.hbm_to_vmem [thread:$0]  %s340_s2, 512, %s21_s16, [#allocation3], %s275_s18, %s275_s18, %s276_s19  }
   0xd   :  { %270 = dma.done.wait [#allocation3], 512  }
   0xe   :  { %271 = vsyncadd [#allocation3], 4294966784  ;;  %v277_v0 = vmov 0   ;;  %v40_v1 = vld [vmem:[%s339_s1] sm:$0xff]  ;;  %v41_v2 = vld [vmem:[%s339_s1 + $0x8] sm:$0xff]  ;;  %vm36_vm2 = vcmask 254976  }
   0xf   :  { %227 = vset.pattern.permute.xlu0 %v277_v0  ;;  %vm42_vm0 = vcmp.eq.s32.totalorder %v40_v1, 0  ;;  %vm43_vm1 = vcmp.eq.s32.totalorder %v41_v2, 0  ;;  %v278_v5 = vmov -1e+12   ;;  %vm56_vm3 = vcmask 261120   ;;  %v87_v7 = vld [vmem:[#allocation2 + $0x18] sm:$0xff] }
  0x10   :  { %v44_v3 = vsel %vm42_vm0, 1, %v277_v0  ;;  %v45_v4 = vsel %vm43_vm1, 1, %v277_v0  ;;  %37 = vst.msk [vmem:[#allocation5] sm:$0x3] %vm36_vm2, %v278_v5  ;;  %v279_v6 = vmov 0.0   ;;  %v86_v8 = vld [vmem:[#allocation2 + $0x10] sm:$0xff] }
  0x11   :  { %47 = vperm.xlu0 %227, %v44_v3   ;;  %208 = vmatprep.subr.mxu0 %v279_v6  ;;  %v85_v9 = vld [vmem:[#allocation2 + $0x8] sm:$0xff]  ;;  %vm280_vm4 = vmmov 0   ;;  %v84_v10 = vld [vmem:[#allocation2] sm:$0xff]  ;;  %vm74_vm7 = vcmask 1041409   ;;  %s281_s29 = smov [#allocation5]  }
  0x12   :  { %209 = vmatpush3.xpose.msk.msra.mxu0 %vm56_vm3, %v87_v7  ;;  %216 = vmatprep.mubr.msk.f32.mxu0 %vm280_vm4, %v279_v6  ;;  %v38_v11 = vld [vmem:[%s338_s0] sm:$0xff]  ;;  %v39_v15 = vld [vmem:[%s338_s0 + $0x8] sm:$0xff]  ;;  %s188_s30 = sshll.u32 %s281_s29, 4  ;;  %s189_s30 = int_to_ptr.vmem [resolvable:$true] %s188_s30 }
  0x13   :  { %210 = vmatprep.subr.mxu0 %v279_v6  ;;  %v197_v35 = vld [vmem:[%s341_s3] ss:$0 sm:$0xff]  ;;  %s250_s5 = scalar_lea.vmem %s189_s30, 32  ;;  %p255_p6 = scmp.lt.s32.totalorder %s189_s30, %s189_s30 }
  0x14   :  { %p251_p5 = scmp.ne.s32.totalorder %s189_s30, %s250_s5  ;;  %p256_p7 = scmp.lt.s32.totalorder %s250_s5, %s250_s5 }
  0x15   :  { %50 = vperm.xlu0 %227, %v45_v4  }
  0x16   :  { %211 = vmatpush3.xpose.msk.msra.mxu0 %vm56_vm3, %v86_v8  ;;  %p257_p8 = por %p256_p7, %p255_p6 }
  0x17   :  { %212 = vmatprep.subr.mxu0 %v279_v6  ;;  %v71_v31 = vld [vmem:[#allocation5] sm:$0x3] }
  0x18   :  { %p258_p9 = pnand %p257_p8, %p251_p5 }
  0x1a   :  { %213 = vmatpush3.xpose.msk.msra.mxu0 %vm56_vm3, %v85_v9 }
  0x1b   :  { %214 = vmatprep.subr.mxu0 %v279_v6 }
  0x1e   :  { %215 = vmatpush3.xpose.msk.msra.mxu0 %vm56_vm3, %v84_v10 }
  0x8c   :  { %v48_v12 = vpop.permute.xlu0 %47 }
  0x8d   :  { %vm52_vm5 = vcmp.eq.s32.totalorder %v48_v12, 1 }
  0x8e   :  { %v54_v13 = vsel %vm52_vm5, -1e+12, %v38_v11 }
  0x8f   :  { %v57_v14 = vsel %vm56_vm3, %v54_v13, -inf }
  0x90   :  { %v58_v16 = vrot.slane %v57_v14, 4  ;;  %v51_v17 = vpop.permute.xlu0 %50 }
  0x91   :  { %vm53_vm6 = vcmp.eq.s32.totalorder %v51_v17, 1 }
  0x92   :  { %v59_v18 = vmax.f32 %v57_v14, %v58_v16  ;;  %v55_v19 = vsel %vm53_vm6, -1e+12, %v39_v15 }
  0x93   :  { %v64_v20 = vsel %vm56_vm3, %v55_v19, -inf }
  0x94   :  { %v60_v21 = vrot.slane %v59_v18, 2  ;;  %v65_v22 = vrot.slane %v64_v20, 4 }
  0x96   :  { %v61_v23 = vmax.f32 %v59_v18, %v60_v21  ;;  %v66_v24 = vmax.f32 %v64_v20, %v65_v22 }
  0x98   :  { %v67_v25 = vrot.slane %v66_v24, 2  ;;  %v62_v26 = vrot.slane %v61_v23, 1 }
  0x9a   :  { %v68_v27 = vmax.f32 %v66_v24, %v67_v25  ;;  %v63_v29 = vmax.f32 %v61_v23, %v62_v26 }
  0x9c   :  { %v69_v28 = vrot.slane %v68_v27, 1 }
  0x9e   :  { %v70_v30 = vmax.f32 %v68_v27, %v69_v28 }
  0xa0   :  { %v75_v32 = vsel %vm74_vm7, %v70_v30, %v63_v29 }
  0xa1   :  { %v77_v33 = vmax.f32 %v71_v31, %v75_v32 }
  0xa3   :  { %79 = vst.msk [vmem:[#allocation5] sm:$0x3] %vm36_vm2, %v77_v33 }
  0xaa   :  { %v83_v34 = vld [vmem:[#allocation5] sm:$0x3] }
  0xab   :  { %217 = vmatmul.mubr.msk.f32.vlgmr.msra.gmra.mxu0 %vm56_vm3, %v83_v34 }
 0x16b   :  { %v176_v36 = vpop.f32.mrf.mxu0 }
 0x16c   :  { %v177_v37 = vadd.f32 %v197_v35, %v176_v36 }
 0x16d   :  { %v218_v38 = vpop.f32.mrf.mxu0 }
 0x16e   :  { %228 = vtanh.f32 %v177_v37 }
 0x17b   :  { %v229_v39 = vpop.eup %228 }
 0x17c   :  { %181 = vst.msk [vmem:[#allocation5] sm:$0x3] %vm36_vm2, %v229_v39 }
 0x17d   :  { %261 = shalt.err (!%p258_p9)
}
 0x17e   :  { %191 = dma.vmem_to_hbm [thread:$0]  %s189_s30, 32, %s342_s4, [#allocation4]  }
 0x17f   :  { %272 = dma.done.wait [#allocation4], 32  }
 0x180   :  { %273 = vsyncadd [#allocation4], 4294967264 }
 0x181   :  { %195 = vsyncpa [#allocation3], 1 }
 0x182   :  { %196 = vsyncpa [#allocation4], 1 }

</bundles_post_ra>
